<compile_context>
chip_gen: v7x
topology: tpu7x:2x2x1
jax: 0.10.0
libtpu: 0.0.40
codegen_flags: <defaults>
</compile_context>

<pallas_src>
import functools

import jax
import jax.numpy as jnp
from jax.experimental import pallas as pl
from jax.experimental.pallas import tpu as pltpu


def _round_up(x, m):
    return (x + m - 1) // m * m


def _pick_tile_m(m_rows):
    """Tile the flattened M dim: aim for 256-row MXU tiles but keep at least
    two grid steps when the problem allows (v7x has 2 TensorCores)."""
    tm = 256
    while tm > 16 and m_rows < 2 * tm:
        tm //= 2
    return tm


def _fused_residual_kernel(p_ref, w_ref, sb_ref, o_ref, *, cpad):
    """One grid step == one (TM, K) tile of im2col rows.

    p_ref : (TM, K)        bf16 im2col patches (K = 9*Ci)
    w_ref : (K, 2*Cpad)    bf16 fused weights  [conv1 | conv2], zero padded
    sb_ref: (2, 2*Cpad)    f32  row0 = folded BN scale, row1 = folded bias
    o_ref : (TM, Cpad)     f32  ReLU(ReLU(y1) + y2), channel-padded
    """
    acc = jnp.dot(p_ref[...], w_ref[...],
                  preferred_element_type=jnp.float32)       # (TM, 2*Cpad) f32
    sb = sb_ref[...]                                         # (2, 2*Cpad) f32
    y = acc * sb[0:1, :] + sb[1:2, :]                        # folded BN affine
    y1 = jnp.maximum(y[:, :cpad], 0.0)                       # resblock branch
    y2 = y[:, cpad:]                                         # prep branch
    o_ref[...] = jnp.maximum(y1 + y2, 0.0)


def residual_block_pallas(x_nchw, params, stride):
    """x_nchw: (N, Ci, H, W) float32.  Returns (N, Co, Hout, Wout) float32."""
    (w1, b1, g1, be1, m1, v1,
     w2, b2, g2, be2, m2, v2, eps) = params

    n, ci, h, w = x_nchw.shape
    co = w1.shape[0]
    hout = (h + 2 - 3) // stride + 1
    wout = (w + 2 - 3) // stride + 1
    k = 9 * ci
    cpad = _round_up(co, 128)

    # ---- im2col: NCHW -> NHWC, zero-pad, gather the 9 taps (with stride) ----
    x_nhwc = jnp.transpose(x_nchw, (0, 2, 3, 1))
    x_pad = jnp.pad(x_nhwc, ((0, 0), (1, 1), (1, 1), (0, 0)))
    taps = []
    for kh in range(3):
        for kw in range(3):
            taps.append(jax.lax.slice(
                x_pad,
                (0, kh, kw, 0),
                (n, kh + stride * (hout - 1) + 1,
                 kw + stride * (wout - 1) + 1, ci),
                (1, stride, stride, 1)))                 # (N, Hout, Wout, Ci)
    patches = jnp.concatenate(taps, axis=-1)             # (N, Hout, Wout, 9*Ci)
    m_rows = n * hout * wout
    patches = patches.reshape(m_rows, k).astype(jnp.bfloat16)

    tm = _pick_tile_m(m_rows)
    m_padded = _round_up(m_rows, tm)
    if m_padded != m_rows:
        patches = jnp.pad(patches, ((0, m_padded - m_rows), (0, 0)))

    # ---- fused weight slab: [conv1 | conv2] along (padded) out channels ----
    def repack(wt):  # (Co, Ci, 3, 3) -> (9*Ci, Co), tap-major, ci fastest
        return jnp.transpose(wt, (2, 3, 1, 0)).reshape(k, co)

    w_slab = jnp.zeros((k, 2 * cpad), jnp.float32)
    w_slab = w_slab.at[:, :co].set(repack(w1).astype(jnp.float32))
    w_slab = w_slab.at[:, cpad:cpad + co].set(repack(w2).astype(jnp.float32))
    w_slab = w_slab.astype(jnp.bfloat16)

    # ---- fold conv bias + BN(eval) into one per-channel affine ----
    def fold(bias, gamma, beta, mean, var):
        scale = gamma / jnp.sqrt(var + eps)
        shift = beta + (bias - mean) * scale
        return scale, shift

    s1, sh1 = fold(b1, g1, be1, m1, v1)
    s2, sh2 = fold(b2, g2, be2, m2, v2)
    scale = jnp.zeros((2 * cpad,), jnp.float32)
    scale = scale.at[:co].set(s1).at[cpad:cpad + co].set(s2)
    shift = jnp.zeros((2 * cpad,), jnp.float32)
    shift = shift.at[:co].set(sh1).at[cpad:cpad + co].set(sh2)
    sb = jnp.stack([scale, shift], axis=0)               # (2, 2*Cpad) f32

    kernel = functools.partial(_fused_residual_kernel, cpad=cpad)

    out_flat = pl.pallas_call(
        kernel,
        out_shape=jax.ShapeDtypeStruct((m_padded, cpad), jnp.float32),
        grid_spec=pltpu.PrefetchScalarGridSpec(
            num_scalar_prefetch=0,
            grid=(m_padded // tm,),
            in_specs=[
                pl.BlockSpec((tm, k), lambda i: (i, 0)),
                pl.BlockSpec((k, 2 * cpad), lambda i: (0, 0)),
                pl.BlockSpec((2, 2 * cpad), lambda i: (0, 0)),
            ],
            out_specs=pl.BlockSpec((tm, cpad), lambda i: (i, 0)),
        ),
        compiler_params=pltpu.CompilerParams(
            dimension_semantics=("parallel",)),
    )(patches, w_slab, sb)

    out = out_flat[:m_rows, :co].reshape(n, hout, wout, co)
    return jnp.transpose(out, (0, 3, 1, 2))              # back to NCHW


def residual_block_reference(x_nchw, params, stride):
    """Pure-JAX f32 reference (lax.conv) for correctness check."""
    (w1, b1, g1, be1, m1, v1,
     w2, b2, g2, be2, m2, v2, eps) = params
    dn = ("NCHW", "OIHW", "NCHW")

    def conv_bn(x, wt, bias, gamma, beta, mean, var):
        y = jax.lax.conv_general_dilated(
            x, wt, (stride, stride), ((1, 1), (1, 1)), dimension_numbers=dn)
        y = y + bias[None, :, None, None]
        scale = gamma / jnp.sqrt(var + eps)
        return (y - mean[None, :, None, None]) * scale[None, :, None, None] \
            + beta[None, :, None, None]

    y1 = jnp.maximum(conv_bn(x_nchw, w1, b1, g1, be1, m1, v1), 0.0)
    y2 = conv_bn(x_nchw, w2, b2, g2, be2, m2, v2)
    return jnp.maximum(y1 + y2, 0.0)


def make_params(key, ci, co):
    k = jax.random.split(key, 8)
    fan_in = ci * 9
    bound = 1.0 / jnp.sqrt(fan_in)
    w1 = jax.random.uniform(k[0], (co, ci, 3, 3), jnp.float32, -bound, bound)
    b1 = jax.random.uniform(k[1], (co,), jnp.float32, -bound, bound)
    w2 = jax.random.uniform(k[2], (co, ci, 3, 3), jnp.float32, -bound, bound)
    b2 = jax.random.uniform(k[3], (co,), jnp.float32, -bound, bound)
    # BatchNorm params (slightly perturbed from defaults, deterministic).
    g1 = 1.0 + 0.1 * jax.random.normal(k[4], (co,), jnp.float32)
    be1 = 0.1 * jax.random.normal(k[5], (co,), jnp.float32)
    g2 = 1.0 + 0.1 * jax.random.normal(k[6], (co,), jnp.float32)
    be2 = 0.1 * jax.random.normal(k[7], (co,), jnp.float32)
    m1 = jnp.zeros((co,), jnp.float32)
    v1 = jnp.ones((co,), jnp.float32)
    m2 = jnp.zeros((co,), jnp.float32)
    v2 = jnp.ones((co,), jnp.float32)
    eps = 1e-5
    return (w1, b1, g1, be1, m1, v1, w2, b2, g2, be2, m2, v2, eps)


if __name__ == "__main__":
    key = jax.random.PRNGKey(0)
    kx, kp = jax.random.split(key)

    N, CI, CO, H, W, S = 2, 4, 8, 16, 16, 2
    x = jax.random.normal(kx, (N, CI, H, W), jnp.float32)
    params = make_params(kp, CI, CO)

    out = residual_block_pallas(x, params, S)
    out = jax.block_until_ready(out)

    ref = residual_block_reference(x, params, S)
    assert out.shape == ref.shape, (out.shape, ref.shape)
    # Tolerance loosened vs the f32 reference because the matmul inputs are
    # bf16 (f32 accumulation) inside the kernel.
    max_err = float(jnp.max(jnp.abs(out - ref)))
    assert jnp.allclose(out, ref, atol=7.5e-2, rtol=5e-2), max_err

    print("KERNEL_OK")
</pallas_src>

<mosaic_0001>
module attributes {stable_mosaic.version = 11 : i64} {
  func.func @_fused_residual_kernel(%arg0: i32, %arg1: memref<64x36xbf16, #tpu.memory_space<vmem>>, %arg2: memref<36x256xbf16, #tpu.memory_space<vmem>>, %arg3: memref<2x256xf32, #tpu.memory_space<vmem>>, %arg4: memref<64x128xf32, #tpu.memory_space<vmem>>) attributes {dimension_semantics = [#tpu.dimension_semantics<parallel>], iteration_bounds = array<i64: 2>, scalar_prefetch = 0 : i64, scratch_operands = 0 : i64, tpu.core_type = #tpu.core_type<tc>, window_params = [{transform_indices = @transform_0, window_bounds = array<i64: 64, 36>}, {pipeline_mode = #tpu.pipeline_mode<synchronous>, transform_indices = @transform_1, window_bounds = array<i64: 36, 256>}, {pipeline_mode = #tpu.pipeline_mode<synchronous>, transform_indices = @transform_2, window_bounds = array<i64: 2, 256>}, {transform_indices = @transform_3, window_bounds = array<i64: 64, 128>}]} {
    %c0 = arith.constant 0 : index
    %c0_0 = arith.constant 0 : index
    %0 = vector.load %arg1[%c0, %c0_0] : memref<64x36xbf16, #tpu.memory_space<vmem>>, vector<64x36xbf16>
    %c0_1 = arith.constant 0 : index
    %c0_2 = arith.constant 0 : index
    %1 = vector.load %arg2[%c0_1, %c0_2] : memref<36x256xbf16, #tpu.memory_space<vmem>>, vector<36x256xbf16>
    %cst = arith.constant dense<0.000000e+00> : vector<64x256xf32>
    %2 = tpu.matmul %0, %1, %cst {dimension_numbers = #tpu.dot_dimension_numbers<[1], [0], [0], [1], [0, 0, 1, 1], [], []>} : vector<64x36xbf16>, vector<36x256xbf16>, vector<64x256xf32> -> vector<64x256xf32>
    %c0_3 = arith.constant 0 : index
    %c0_4 = arith.constant 0 : index
    %3 = vector.load %arg3[%c0_3, %c0_4] : memref<2x256xf32, #tpu.memory_space<vmem>>, vector<2x256xf32>
    %4 = vector.extract_strided_slice %3 {offsets = [0, 0], sizes = [1, 256], strides = [1, 1]} : vector<2x256xf32> to vector<1x256xf32>
    %5 = vector.broadcast %4 : vector<1x256xf32> to vector<64x256xf32>
    %6 = arith.mulf %2, %5 : vector<64x256xf32>
    %7 = vector.extract_strided_slice %3 {offsets = [1, 0], sizes = [1, 256], strides = [1, 1]} : vector<2x256xf32> to vector<1x256xf32>
    %8 = vector.broadcast %7 : vector<1x256xf32> to vector<64x256xf32>
    %9 = arith.addf %6, %8 : vector<64x256xf32>
    %10 = vector.extract_strided_slice %9 {offsets = [0, 0], sizes = [64, 128], strides = [1, 1]} : vector<64x256xf32> to vector<64x128xf32>
    %cst_5 = arith.constant 0.000000e+00 : f32
    %11 = vector.broadcast %cst_5 : f32 to vector<64x128xf32>
    %12 = arith.maximumf %10, %11 : vector<64x128xf32>
    %13 = vector.extract_strided_slice %9 {offsets = [0, 128], sizes = [64, 128], strides = [1, 1]} : vector<64x256xf32> to vector<64x128xf32>
    %14 = arith.addf %12, %13 : vector<64x128xf32>
    %cst_6 = arith.constant 0.000000e+00 : f32
    %15 = vector.broadcast %cst_6 : f32 to vector<64x128xf32>
    %16 = arith.maximumf %14, %15 : vector<64x128xf32>
    %c0_7 = arith.constant 0 : index
    %c0_8 = arith.constant 0 : index
    %17 = vector.load %arg4[%c0_7, %c0_8] : memref<64x128xf32, #tpu.memory_space<vmem>>, vector<64x128xf32>
    tpu.vector_store %arg4[%c0_7, %c0_8], %16 {strides = array<i32>} : memref<64x128xf32, #tpu.memory_space<vmem>>, vector<64x128xf32>,
    return
  }
  func.func @transform_0(%arg0: i32) -> (i32, i32) {
    %c0_i32 = arith.constant 0 : i32
    %c0_i32_0 = arith.constant 0 : i32
    return %arg0, %c0_i32 : i32, i32
  }
  func.func @transform_1(%arg0: i32) -> (i32, i32) {
    %c0_i32 = arith.constant 0 : i32
    %c0_i32_0 = arith.constant 0 : i32
    %c0_i32_1 = arith.constant 0 : i32
    return %c0_i32, %c0_i32_0 : i32, i32
  }
  func.func @transform_2(%arg0: i32) -> (i32, i32) {
    %c0_i32 = arith.constant 0 : i32
    %c0_i32_0 = arith.constant 0 : i32
    %c0_i32_1 = arith.constant 0 : i32
    return %c0_i32, %c0_i32_0 : i32, i32
  }
  func.func @transform_3(%arg0: i32) -> (i32, i32) {
    %c0_i32 = arith.constant 0 : i32
    %c0_i32_0 = arith.constant 0 : i32
    return %arg0, %c0_i32 : i32, i32
  }
}

</mosaic_0001>

<bundles_post_ra>
// kernel: tpu_custom_call.1
= control target key start
LH: loop header
LB: loop body
LE: loop exit
PB: predicated region body
PF: predicated region fallthrough
CT: control target
= control target key end

     0   :  { %8 = vsyncpa [#allocation3], 0  ;;  %s843_s0 = inlined_call_operand.vmem [shape: bf16[128,36], index: 0, kind: input, shape index: {}]   ;;  %s844_s1 = inlined_call_operand.vmem [shape: bf16[36,256], index: 1, kind: input, shape index: {}]   ;;  %s845_s2 = inlined_call_operand.vmem [shape: f32[2,256], index: 2, kind: input, shape index: {}]   ;;  %s846_s3 = inlined_call_operand.hbm [shape: f32[128,128], index: 3, kind: output, shape index: {}]  }
   0x1   :  { %10 = vsyncpa [#allocation3 + $0x1], 0  ;;  %s678_s12 = smov 0   ;;  %s680_s13 = smov 0  }
   0x2   :  { %s682_s14 = smov 0   ;;  %s684_s15 = smov 0  }
   0x3 LB: > { %s699_s16 = sadd.s32 4294967295, %s652_s15   ;;  %s502_s17 = sadd.s32 4294967294, %s652_s15   ;;  %s652_s15 = sphi %s684_s15, %s852_s15   ;;  %s648_s14 = sphi %s682_s14, %s851_s14   ;;  %s644_s13 = sphi %s680_s13, %s850_s13   ;;  %s640_s12 = sphi %s678_s12, %s849_s12  }
   0x4   : > { %s703_s18 = sadd.s32 1, %s652_s15   ;;  %s91_s19 = sadd.s32 1, %s648_s14 }
   0x5   : > { %s88_s20 = ssub.s32 %s652_s15, %s703_s18  ;;  %p101_p0 = scmp.ne.s32.totalorder %s648_s14, %s644_s13 }
   0x6   : > { %p89_p1 = scmp.eq.s32.totalorder %s88_s20, 0  ;;  %p102_p2 = scmp.eq.s32.totalorder %s699_s16, 1 }
   0x7   : > { %p107_p3 = scmp.ne.s32.totalorder %s644_s13, %s640_s12  ;;  %p108_p4 = scmp.eq.s32.totalorder %s502_s17, 1 }
   0x8   : > { %s714_s21 = scalar_select %p89_p1, %s648_s14, %s91_s19  }
   0x9   : > { %p716_p5 = por %p102_p2, %p101_p0  ;;  %p720_p6 = por %p108_p4, %p107_p3 }
   0xa   : > { %p505_p7 = scmp.ge.s32.totalorder %s652_s15, 1  ;;  %p141_p8 = scmp.lt.s32.totalorder %s652_s15, 3 }
   0xc   : > { %p142_p9 = pnand %p505_p7, %p141_p8 }
   0xd   : > { %v578_v0 = vld [vmem:[%s844_s1 + $0x4] ss:$8 sps:$4 sm:$0xff] (!%p142_p9)   ;;  %v580_v1 = vld [vmem:[%s844_s1] ss:$8 sps:$4 sm:$0xff] (!%p142_p9)   ;;  %v654_v2 = vmov (!%p142_p9), 0   ;;  %s507_s28 = sshll.u32 (!%p142_p9), %s699_s16, 3  ;;  %v326_v13 = vlaneseq (!%p142_p9) }
   0xe   : > { %145 = sbr.rel (%p142_p9) target bundleno = 275 (0x113), region = 32  ;;  %283 = vmatprep.mubr.bf16.mxu0 (!%p142_p9), %v654_v2  ;;  %303 = vmatprep.mubr.bf16.mxu1 (!%p142_p9), %v654_v2  ;;  %v581_v3 = vld [vmem:[%s844_s1 + $0x14] ss:$8 sps:$4 sm:$0xff] (!%p142_p9)   ;;  %v185_v4 = vld [vmem:[%s844_s1 + $0x20] sm:$0x33] (!%p142_p9)  ;;  %p166_p10 = scmp.lt.s32.totalorder (!%p142_p9), %s507_s28, 15 }
   0xf   : > { %251 = vmatprep.subr.bf16.mxu0 (!%p142_p9), %v578_v0  ;;  %530 = vmatprep.subr.bf16.mxu1 (!%p142_p9), %v578_v0  ;;  %v583_v5 = vld [vmem:[%s844_s1 + $0x10] ss:$8 sps:$4 sm:$0xff] (!%p142_p9)   ;;  %v518_v6 = vcombine.high (!%p142_p9), %v185_v4, %v185_v4  ;;  %v517_v7 = vcombine.low (!%p142_p9), %v185_v4, %v185_v4  ;;  %vm244_vm0 = vcmask (!%p142_p9), 1041408   ;;  %vm231_vm1 = vcmask (!%p142_p9), 293888   ;;  %v324_v16 = vld [vmem:[%s845_s2] sm:$0xf] (!%p142_p9) }
  0x10   : > { %252 = vmatpush1.bf16.msra.mxu0 (!%p142_p9), %v580_v1  ;;  %533 = vmatpush1.bf16.msra.mxu1 (!%p142_p9), %v580_v1  ;;  %v327_v14 = vshrl.u32 (!%p142_p9), %v326_v13, 7  ;;  %s162_s20 = sand.u32 (!%p142_p9), 1, %s644_s13   ;;  %s529_s26 = sshll.u32 (!%p142_p9), %s699_s16, 10 }
  0x11   : > { %253 = vmatprep.subr.bf16.mxu0 (!%p142_p9), %v581_v3  ;;  %531 = vmatprep.subr.bf16.mxu1 (!%p142_p9), %v581_v3  ;;  %v246_v8 = vsel (!%p142_p9), %vm244_vm0, %v517_v7, 0  ;;  %s506_s24 = sshll.u32 (!%p142_p9), %s162_s20, 6  ;;  %s792_s30 = scalar_lea.hbm (!%p142_p9), %s846_s3, %s529_s26 }
  0x12   : > { %v328_v15 = vsub.s32 (!%p142_p9), 0, %v327_v14  ;;  %v332_v17 = vsub.s32 (!%p142_p9), 2, %v327_v14  ;;  %v362_v18 = vsub.s32 (!%p142_p9), 1, %v327_v14  ;;  %v366_v19 = vsub.s32 (!%p142_p9), 3, %v327_v14  ;;  %s771_s25 = scalar_lea.vmem (!%p142_p9), [#allocation2], %s506_s24  ;;  %s802_s16 = scalar_lea.sflag (!%p142_p9), [#allocation3], %s162_s20 }
  0x13   : > { %s440_s27 = sshll.u32 (!%p142_p9), %s771_s25, 4  ;;  %s655_s5 = smov (!%p142_p9), [#allocation2]   ;;  %s794_s27 = int_to_ptr.vmem [resolvable:$true] %s440_s27 }
  0x14   : > { %254 = vmatpush1.bf16.msra.mxu0 (!%p142_p9), %v583_v5  ;;  %534 = vmatpush1.bf16.msra.mxu1 (!%p142_p9), %v583_v5  ;;  %v329_v20 = vrot.slane (!%p142_p9), %v324_v16, %v328_v15  ;;  %v333_v21 = vrot.slane (!%p142_p9), %v324_v16, %v332_v17  ;;  %v363_v22 = vrot.slane (!%p142_p9), %v324_v16, %v362_v18  ;;  %s590_s4 = scalar_lea.vmem (!%p142_p9), %s794_s27, 1024  ;;  %s594_s6 = sshll.u32 (!%p142_p9), %s655_s5, 4  ;;  %s595_s6 = int_to_ptr.vmem [resolvable:$false] %s594_s6 }
  0x15   : > { %s854_s28 = smov (!%p166_p10, %s507_s28), 15  ;;  %519 = vmatprep.subr.msk.bf16.mxu0 %vm244_vm0, %v518_v6  ;;  %532 = vmatprep.subr.msk.bf16.mxu1 %vm244_vm0, %v518_v6  ;;  %v367_v23 = vrot.slane %v324_v16, %v366_v19  ;;  %p591_p11 = scmp.ne.s32.totalorder %s794_s27, %s590_s4 }
  0x16   : > { %s508_s8 = sshll.u32 %s854_s28, 2  ;;  %v339_v24 = vrot.slane %v329_v20, %v328_v15  ;;  %v748_v25 = vrot.slane %v333_v21, %v328_v15  ;;  %v750_v26 = vrot.slane %v363_v22, %v362_v18  ;;  %s596_s7 = scalar_lea.vmem %s595_s6, 2048 }
  0x17   : > { %s169_s11 = scalar_lea.vmem %s843_s0, %s508_s8  ;;  %v752_v29 = vrot.slane %v367_v23, %v362_v18  ;;  %p592_p12 = pnand %p591_p11, %p716_p5 }
  0x18   : > { %v586_v9 = vld [vmem:[%s169_s11] sm:$0xff]   ;;  %v587_v10 = vld [vmem:[%s169_s11 + $0x10] sm:$0xff]   ;;  %256 = vmatpush1.bf16.msra.mxu0 %v246_v8  ;;  %535 = vmatpush1.bf16.msra.mxu1 %v246_v8  ;;  %v588_v11 = vld [vmem:[%s169_s11 + $0x8] sm:$0xff]   ;;  %p597_p0 = scmp.lt.s32.totalorder %s794_s27, %s595_s6  ;;  %p598_p1 = scmp.lt.s32.totalorder %s596_s7, %s590_s4 }
  0x19   : > { %v589_v12 = vld [vmem:[%s169_s11 + $0x18] sm:$0xff]   ;;  %p593_p13 = pneg %p592_p12 }
  0x1a   : > { %p599_p2 = por %p598_p1, %p597_p0 }
  0x1b   : > { %520 = vmatmul.mubr.msk.bf16.vlgmr.msra.gmra.mrb[0].mxu0 %vm231_vm1, %v586_v9  ;;  %522 = vmatmul.mubr.msk.bf16.vlgmr.msra.gmra.mrb[0].mxu1 %vm231_vm1, %v587_v10 }
  0x1c   : > { %293 = vmatprep.mubr.bf16.mxu0 %v654_v2  ;;  %313 = vmatprep.mubr.bf16.mxu1 %v654_v2  ;;  %p600_p3 = pnand %p599_p2, %p593_p13 }
  0x23   : > { %521 = vmatmul.mubr.msk.bf16.gmra.mrb[4].mxu0 %vm231_vm1, %v588_v11  ;;  %523 = vmatmul.mubr.msk.bf16.gmra.mrb[4].mxu1 %vm231_vm1, %v589_v12 }
  0xee   : > { %v285_v27 = vpop.f32.mrb[0].mxu0  ;;  %v305_v28 = vpop.f32.mrb[0].mxu1 }
  0xef   : > { %v344_v30 = vmul.f32 %v339_v24, %v285_v27  ;;  %v352_v31 = vmul.f32 %v339_v24, %v305_v28  ;;  %v287_v32 = vpop.f32.mrb[1].mxu0  ;;  %v307_v33 = vpop.f32.mrb[1].mxu1 }
  0xf0   : > { %v345_v34 = vmul.f32 %v748_v25, %v287_v32  ;;  %v353_v35 = vmul.f32 %v748_v25, %v307_v33  ;;  %v289_v36 = vpop.f32.mrb[2].mxu0  ;;  %v309_v37 = vpop.f32.mrb[2].mxu1 }
  0xf1   : > { %v378_v38 = vadd.f32 %v750_v26, %v344_v30  ;;  %v386_v39 = vadd.f32 %v750_v26, %v352_v31  ;;  %v346_v40 = vmul.f32 %v339_v24, %v289_v36  ;;  %v354_v41 = vmul.f32 %v339_v24, %v309_v37  ;;  %v291_v42 = vpop.f32.mrb[3].mxu0  ;;  %v311_v43 = vpop.f32.mrb[3].mxu1 }
  0xf2   : > { %v379_v44 = vadd.f32 %v752_v29, %v345_v34  ;;  %v387_v45 = vadd.f32 %v752_v29, %v353_v35  ;;  %v347_v46 = vmul.f32 %v748_v25, %v291_v42  ;;  %v355_v47 = vmul.f32 %v748_v25, %v311_v43 }
  0xf3   : > { %v394_v48 = vmax.f32 %v378_v38, 0.0  ;;  %v398_v49 = vmax.f32 %v386_v39, 0.0  ;;  %v380_v50 = vadd.f32 %v750_v26, %v346_v40  ;;  %v388_v51 = vadd.f32 %v750_v26, %v354_v41 }
  0xf4   : > { %v381_v52 = vadd.f32 %v752_v29, %v347_v46  ;;  %v389_v53 = vadd.f32 %v752_v29, %v355_v47 }
  0xf5   : > { %v402_v54 = vadd.f32 %v394_v48, %v379_v44  ;;  %v406_v55 = vadd.f32 %v398_v49, %v387_v45  ;;  %v395_v56 = vmax.f32 %v380_v50, 0.0  ;;  %v399_v57 = vmax.f32 %v388_v51, 0.0 }
  0xf6   : > { %v295_v58 = vpop.f32.mrb[4].mxu0  ;;  %v315_v59 = vpop.f32.mrb[4].mxu1 }
  0xf7   : > { %v410_v60 = vmax.f32 %v402_v54, 0.0  ;;  %v414_v61 = vmax.f32 %v406_v55, 0.0  ;;  %v403_v62 = vadd.f32 %v395_v56, %v381_v52  ;;  %v407_v63 = vadd.f32 %v399_v57, %v389_v53  ;;  %v297_v0 = vpop.f32.mrb[5].mxu0  ;;  %v317_v1 = vpop.f32.mrb[5].mxu1 }
  0xf8   : > { %v348_v2 = vmul.f32 %v339_v24, %v295_v58  ;;  %v356_v3 = vmul.f32 %v339_v24, %v315_v59  ;;  %v349_v4 = vmul.f32 %v748_v25, %v297_v0  ;;  %v357_v5 = vmul.f32 %v748_v25, %v317_v1  ;;  %v299_v6 = vpop.f32.mrb[6].mxu0  ;;  %v319_v7 = vpop.f32.mrb[6].mxu1 }
  0xf9   : > { %418 = vst [vmem:[%s771_s25] sm:$0xff] %v410_v60  ;;  %422 = vst [vmem:[%s771_s25 + $0x20] sm:$0xff] %v414_v61  ;;  %v411_v8 = vmax.f32 %v403_v62, 0.0  ;;  %v415_v9 = vmax.f32 %v407_v63, 0.0  ;;  %v350_v10 = vmul.f32 %v339_v24, %v299_v6  ;;  %v358_v11 = vmul.f32 %v339_v24, %v319_v7  ;;  %v301_v12 = vpop.f32.mrb[7].mxu0  ;;  %v321_v13 = vpop.f32.mrb[7].mxu1 }
  0xfa   : > { %v382_v14 = vadd.f32 %v750_v26, %v348_v2  ;;  %v390_v15 = vadd.f32 %v750_v26, %v356_v3  ;;  %v383_v16 = vadd.f32 %v752_v29, %v349_v4  ;;  %v391_v17 = vadd.f32 %v752_v29, %v357_v5 }
  0xfb   : > { %419 = vst [vmem:[%s771_s25 + $0x8] sm:$0xff] %v411_v8  ;;  %423 = vst [vmem:[%s771_s25 + $0x28] sm:$0xff] %v415_v9  ;;  %v384_v18 = vadd.f32 %v750_v26, %v350_v10  ;;  %v392_v19 = vadd.f32 %v750_v26, %v358_v11  ;;  %v351_v20 = vmul.f32 %v748_v25, %v301_v12 }
  0xfc   : > { %v359_v21 = vmul.f32 %v748_v25, %v321_v13  ;;  %v396_v22 = vmax.f32 %v382_v14, 0.0  ;;  %v400_v23 = vmax.f32 %v390_v15, 0.0 }
  0xfd   : > { %v397_v24 = vmax.f32 %v384_v18, 0.0  ;;  %v401_v27 = vmax.f32 %v392_v19, 0.0  ;;  %v385_v28 = vadd.f32 %v752_v29, %v351_v20 }
  0xfe   : > { %v393_v30 = vadd.f32 %v752_v29, %v359_v21  ;;  %v404_v26 = vadd.f32 %v396_v22, %v383_v16  ;;  %v408_v31 = vadd.f32 %v400_v23, %v391_v17 }
  0xff   : > { %v405_v32 = vadd.f32 %v397_v24, %v385_v28 }
 0x100   : > { %v409_v25 = vadd.f32 %v401_v27, %v393_v30  ;;  %v412_v33 = vmax.f32 %v404_v26, 0.0  ;;  %v416_v34 = vmax.f32 %v408_v31, 0.0 }
 0x101   : > { %v413_v29 = vmax.f32 %v405_v32, 0.0 }
 0x102   : > { %v417_v35 = vmax.f32 %v409_v25, 0.0  ;;  %420 = vst [vmem:[%s771_s25 + $0x10] sm:$0xff] %v412_v33  ;;  %424 = vst [vmem:[%s771_s25 + $0x30] sm:$0xff] %v416_v34 }
 0x103   : > { %421 = vst [vmem:[%s771_s25 + $0x18] sm:$0xff] %v413_v29 }
 0x104   : > { %425 = vst [vmem:[%s771_s25 + $0x38] sm:$0xff] %v417_v35 }
 0x105   : > { %603 = shalt.err (!%p600_p3)
}
 0x106   : > { %s604_s8 = scalar_lea.hbm %s792_s30, 1024  ;;  %s608_s11 = scalar_lea.hbm %s846_s3, 2048 }
 0x107   : > { %p605_p4 = scmp.ne.s32.totalorder %s792_s30, %s604_s8  ;;  %p609_p9 = scmp.lt.u32.totalorder %s792_s30, %s846_s3 }
 0x108   : > { %p610_p10 = scmp.lt.u32.totalorder %s608_s11, %s604_s8  ;;  %p612_p12 = scmp.lt.u32.totalorder %s604_s8, %s792_s30 }
 0x109   : > { %p606_p7 = pnand %p605_p4, %p716_p5 }
 0x10a   : > { %p611_p11 = por %p610_p10, %p609_p9 }
 0x10b   : > { %p607_p8 = pneg %p606_p7 }
 0x10c   : > { %p613_p13 = por %p612_p12, %p611_p11 }
 0x10e   : > { %p614_p0 = pnand %p613_p13, %p607_p8 }
 0x110   : > { %617 = shalt.err (!%p614_p0)
}
 0x111   : > { %s656_s20 = smov 128   ;;  %s657_s24 = smov 8  }
 0x112   : > { %536 = dma.vmem_to_hbm [thread:$0]  (%p716_p5), %s794_s27, 1024, %s792_s30, %s802_s16, %s656_s20, %s656_s20, %s657_s24  }
 0x113 PF: > { %p542_p1 = scmp.ge.s32.totalorder %s652_s15, 2  ;;  %s455_s25 = sand.u32 1, %s640_s12  }
 0x114   : > { %s456_s26 = scalar_lea.sflag [#allocation3], %s455_s25 }
 0x115   : > { %p539_p2 = pnand %p542_p1, %p720_p6 }
 0x117   : > { %635 = dma.done.wait (!%p539_p2), %s456_s26, 1024  }
 0x118   : > { %637 = vsyncadd (!%p539_p2), %s456_s26, 4294966272  ;;  %p13_p3 = scmp.ge.s32.totalorder %s703_s18, 4   ;;  %s849_s12 = smov %s644_s13 }
 0x119   : > { %s850_s13 = smov %s648_s14  ;;  %s851_s14 = smov %s714_s21 }
 0x11a   : > { %s852_s15 = smov %s703_s18  ;;  %15 = sbr.rel (!%p13_p3) target bundleno = 3 (0x3), region = 67 }
 0x121   :  { %461 = vsyncpa [#allocation3], 1 }
 0x122   :  { %463 = vsyncpa [#allocation3 + $0x1], 1 }

</bundles_post_ra>
